<compile_context>
chip_gen: v7x
topology: tpu7x:2x2x1
jax: 0.10.0
libtpu: 0.0.40
codegen_flags: <defaults>
</compile_context>

<pallas_src>
import functools

import jax
import jax.numpy as jnp
from jax.experimental import pallas as pl
from jax.experimental.pallas import tpu as pltpu

INPUT_SIZE = 300
H1 = 150
H2 = 50
OUTPUT_SIZE = 1
BN_EPS = 1e-5

# Lane-aligned (multiple-of-128) padded feature dims.
F_IN = 384    # 300 -> 384
F_H1 = 256    # 150 -> 256
F_H2 = 128    # 50  -> 128
F_OUT = 128   # 1   -> 128 (lane-dense output store; sliced back to 1 in wrapper)

DEFAULT_TILE_B = 2048  # ~1.5 MiB bf16 x-tile; fits default scoped VMEM on v5e/v6e/v7x


def _round_up(n, m):
    return (n + m - 1) // m * m


def _mlp_kernel(x_ref, w1_ref, b1_ref, w2_ref, b2_ref, w3_ref, b3_ref, o_ref):
    # x_ref: (TILE_B, F_IN) bf16.  BatchNorm (eval) is pre-folded into w1/b1.
    x = x_ref[...]

    # fc1 + ReLU  (bf16 MXU, f32 accumulate)
    h = jnp.dot(x, w1_ref[...], preferred_element_type=jnp.float32) + b1_ref[...]
    h = jnp.maximum(h, 0.0)

    # fc2 + ReLU
    h = jnp.dot(h.astype(jnp.bfloat16), w2_ref[...],
                preferred_element_type=jnp.float32) + b2_ref[...]
    h = jnp.maximum(h, 0.0)

    # fc3 (output padded to 128 lanes; extra columns carry zero weight/bias)
    y = jnp.dot(h.astype(jnp.bfloat16), w3_ref[...],
                preferred_element_type=jnp.float32) + b3_ref[...]

    # 0.5 * (sigmoid(y) - 0.5)
    o_ref[...] = 0.5 * (jax.nn.sigmoid(y) - 0.5)


def _prepare_folded_params(params):
    """Fold eval-mode BatchNorm into fc1 and zero-pad to lane-aligned shapes."""
    scale = params["gamma"] * jax.lax.rsqrt(params["running_var"] + BN_EPS)  # (1, 300)
    shift = params["beta"] - params["running_mean"] * scale                  # (1, 300)

    w1 = params["w1_t"] * scale.reshape(INPUT_SIZE, 1)        # (300, 150)
    b1 = params["b1"] + shift @ params["w1_t"]                 # (1, 150)

    def pad2(a, rows, cols):
        return jnp.pad(a, ((0, rows - a.shape[0]), (0, cols - a.shape[1])))

    w1p = pad2(w1, F_IN, F_H1).astype(jnp.bfloat16)
    w2p = pad2(params["w2_t"], F_H1, F_H2).astype(jnp.bfloat16)
    w3p = pad2(params["w3_t"], F_H2, F_OUT).astype(jnp.bfloat16)
    b1p = pad2(b1, 1, F_H1).astype(jnp.float32)
    b2p = pad2(params["b2"], 1, F_H2).astype(jnp.float32)
    b3p = pad2(params["b3"], 1, F_OUT).astype(jnp.float32)
    return w1p, b1p, w2p, b2p, w3p, b3p


@functools.partial(jax.jit, static_argnames=("tile_b",))
def base_model_forward(x, params, tile_b=DEFAULT_TILE_B):
    """x: (B, INPUT_SIZE) float32; params: dict of f32 arrays (see init_params)."""
    B = x.shape[0]
    w1p, b1p, w2p, b2p, w3p, b3p = _prepare_folded_params(params)

    # Batch tiling: pick a tile that divides the (padded) batch.
    tb = tile_b if B >= tile_b else _round_up(max(B, 1), 8)
    B_pad = _round_up(B, tb)

    # Zero-pad batch (inert extra rows) and features (inert extra columns),
    # cast x to bf16 in the wrapper (halves HBM bytes streamed).
    xp = jnp.pad(x.astype(jnp.bfloat16),
                 ((0, B_pad - B), (0, F_IN - INPUT_SIZE)))

    grid = (B_pad // tb,)

    def const_map(i):  # weights/biases: same block every step -> stay resident in VMEM
        return (0, 0)

    out = pl.pallas_call(
        _mlp_kernel,
        out_shape=jax.ShapeDtypeStruct((B_pad, F_OUT), jnp.float32),
        grid=grid,
        in_specs=[
            pl.BlockSpec((tb, F_IN), lambda i: (i, 0)),      # x: streamed over batch
            pl.BlockSpec((F_IN, F_H1), const_map),           # w1 (BN folded)
            pl.BlockSpec((1, F_H1), const_map),              # b1 (BN folded)
            pl.BlockSpec((F_H1, F_H2), const_map),           # w2
            pl.BlockSpec((1, F_H2), const_map),              # b2
            pl.BlockSpec((F_H2, F_OUT), const_map),          # w3
            pl.BlockSpec((1, F_OUT), const_map),             # b3
        ],
        out_specs=pl.BlockSpec((tb, F_OUT), lambda i: (i, 0)),
        compiler_params=pltpu.CompilerParams(
            dimension_semantics=("parallel",),               # megacore sharding on v7x
        ),
    )(xp, w1p, b1p, w2p, b2p, w3p, b3p)

    return out[:B, :OUTPUT_SIZE]


def init_params(key):
    """Deterministic init mimicking PyTorch defaults (uniform +/-1/sqrt(fan_in))."""
    ks = jax.random.split(key, 8)

    def linear(kw, kb, fan_in, fan_out):
        bound = 1.0 / jnp.sqrt(fan_in)
        w = jax.random.uniform(kw, (fan_in, fan_out), jnp.float32, -bound, bound)  # (in,out)=W.T
        b = jax.random.uniform(kb, (1, fan_out), jnp.float32, -bound, bound)
        return w, b

    w1_t, b1 = linear(ks[0], ks[1], INPUT_SIZE, H1)
    w2_t, b2 = linear(ks[2], ks[3], H1, H2)
    w3_t, b3 = linear(ks[4], ks[5], H2, OUTPUT_SIZE)

    gamma = 1.0 + 0.1 * jax.random.normal(ks[6], (1, INPUT_SIZE), jnp.float32)
    beta = 0.05 * jax.random.normal(ks[7], (1, INPUT_SIZE), jnp.float32)
    running_mean = jnp.zeros((1, INPUT_SIZE), jnp.float32)
    running_var = jnp.ones((1, INPUT_SIZE), jnp.float32)

    return dict(running_mean=running_mean, running_var=running_var,
                gamma=gamma, beta=beta,
                w1_t=w1_t, b1=b1, w2_t=w2_t, b2=b2, w3_t=w3_t, b3=b3)


def reference_forward(x, p):
    """Pure-f32 JAX reference (un-fused, un-padded)."""
    x = (x - p["running_mean"]) * jax.lax.rsqrt(p["running_var"] + BN_EPS) * p["gamma"] + p["beta"]
    x = jnp.maximum(x @ p["w1_t"] + p["b1"], 0.0)
    x = jnp.maximum(x @ p["w2_t"] + p["b2"], 0.0)
    x = x @ p["w3_t"] + p["b3"]
    return 0.5 * (jax.nn.sigmoid(x) - 0.5)


if __name__ == "__main__":
    key = jax.random.PRNGKey(0)
    kx, kp = jax.random.split(key)

    B = 8
    x = jax.random.normal(kx, (B, INPUT_SIZE), jnp.float32)
    params = init_params(kp)

    out = base_model_forward(x, params)
    out = jax.block_until_ready(out)

    ref = reference_forward(x, params)
    assert out.shape == (B, OUTPUT_SIZE)
    # bf16 MXU path: expect ~1e-3-level deviations vs the f32 reference.
    assert jnp.allclose(out, ref, atol=2e-2, rtol=2e-2), "mismatch vs JAX reference"

    print("KERNEL_OK")
</pallas_src>

<mosaic_0001>
module attributes {stable_mosaic.version = 11 : i64} {
  func.func @_mlp_kernel(%arg0: i32, %arg1: memref<8x384xbf16, #tpu.memory_space<vmem>>, %arg2: memref<384x256xbf16, #tpu.memory_space<vmem>>, %arg3: memref<1x256xf32, #tpu.memory_space<vmem>>, %arg4: memref<256x128xbf16, #tpu.memory_space<vmem>>, %arg5: memref<1x128xf32, #tpu.memory_space<vmem>>, %arg6: memref<128x128xbf16, #tpu.memory_space<vmem>>, %arg7: memref<1x128xf32, #tpu.memory_space<vmem>>, %arg8: memref<8x128xf32, #tpu.memory_space<vmem>>) attributes {dimension_semantics = [#tpu.dimension_semantics<parallel>], iteration_bounds = array<i64: 1>, scalar_prefetch = 0 : i64, scratch_operands = 0 : i64, tpu.core_type = #tpu.core_type<tc>, window_params = [{transform_indices = @transform_0, window_bounds = array<i64: 8, 384>}, {pipeline_mode = #tpu.pipeline_mode<synchronous>, transform_indices = @transform_1, window_bounds = array<i64: 384, 256>}, {pipeline_mode = #tpu.pipeline_mode<synchronous>, transform_indices = @transform_2, window_bounds = array<i64: 1, 256>}, {pipeline_mode = #tpu.pipeline_mode<synchronous>, transform_indices = @transform_3, window_bounds = array<i64: 256, 128>}, {pipeline_mode = #tpu.pipeline_mode<synchronous>, transform_indices = @transform_4, window_bounds = array<i64: 1, 128>}, {pipeline_mode = #tpu.pipeline_mode<synchronous>, transform_indices = @transform_5, window_bounds = array<i64: 128, 128>}, {pipeline_mode = #tpu.pipeline_mode<synchronous>, transform_indices = @transform_6, window_bounds = array<i64: 1, 128>}, {transform_indices = @transform_7, window_bounds = array<i64: 8, 128>}]} {
    %c0 = arith.constant 0 : index
    %c0_0 = arith.constant 0 : index
    %0 = vector.load %arg1[%c0, %c0_0] : memref<8x384xbf16, #tpu.memory_space<vmem>>, vector<8x384xbf16>
    %c0_1 = arith.constant 0 : index
    %c0_2 = arith.constant 0 : index
    %1 = vector.load %arg2[%c0_1, %c0_2] : memref<384x256xbf16, #tpu.memory_space<vmem>>, vector<384x256xbf16>
    %cst = arith.constant dense<0.000000e+00> : vector<8x256xf32>
    %2 = tpu.matmul %0, %1, %cst {dimension_numbers = #tpu.dot_dimension_numbers<[1], [0], [0], [1], [0, 0, 1, 1], [], []>} : vector<8x384xbf16>, vector<384x256xbf16>, vector<8x256xf32> -> vector<8x256xf32>
    %c0_3 = arith.constant 0 : index
    %c0_4 = arith.constant 0 : index
    %3 = vector.load %arg3[%c0_3, %c0_4] : memref<1x256xf32, #tpu.memory_space<vmem>>, vector<1x256xf32>
    %4 = vector.broadcast %3 : vector<1x256xf32> to vector<8x256xf32>
    %5 = arith.addf %2, %4 : vector<8x256xf32>
    %cst_5 = arith.constant 0.000000e+00 : f32
    %6 = vector.broadcast %cst_5 : f32 to vector<8x256xf32>
    %7 = arith.maximumf %5, %6 : vector<8x256xf32>
    %8 = arith.truncf %7 : vector<8x256xf32> to vector<8x256xbf16>
    %c0_6 = arith.constant 0 : index
    %c0_7 = arith.constant 0 : index
    %9 = vector.load %arg4[%c0_6, %c0_7] : memref<256x128xbf16, #tpu.memory_space<vmem>>, vector<256x128xbf16>
    %cst_8 = arith.constant dense<0.000000e+00> : vector<8x128xf32>
    %10 = tpu.matmul %8, %9, %cst_8 {dimension_numbers = #tpu.dot_dimension_numbers<[1], [0], [0], [1], [0, 0, 1, 1], [], []>} : vector<8x256xbf16>, vector<256x128xbf16>, vector<8x128xf32> -> vector<8x128xf32>
    %c0_9 = arith.constant 0 : index
    %c0_10 = arith.constant 0 : index
    %11 = vector.load %arg5[%c0_9, %c0_10] : memref<1x128xf32, #tpu.memory_space<vmem>>, vector<1x128xf32>
    %12 = vector.broadcast %11 : vector<1x128xf32> to vector<8x128xf32>
    %13 = arith.addf %10, %12 : vector<8x128xf32>
    %cst_11 = arith.constant 0.000000e+00 : f32
    %14 = vector.broadcast %cst_11 : f32 to vector<8x128xf32>
    %15 = arith.maximumf %13, %14 : vector<8x128xf32>
    %16 = arith.truncf %15 : vector<8x128xf32> to vector<8x128xbf16>
    %c0_12 = arith.constant 0 : index
    %c0_13 = arith.constant 0 : index
    %17 = vector.load %arg6[%c0_12, %c0_13] : memref<128x128xbf16, #tpu.memory_space<vmem>>, vector<128x128xbf16>
    %cst_14 = arith.constant dense<0.000000e+00> : vector<8x128xf32>
    %18 = tpu.matmul %16, %17, %cst_14 {dimension_numbers = #tpu.dot_dimension_numbers<[1], [0], [0], [1], [0, 0, 1, 1], [], []>} : vector<8x128xbf16>, vector<128x128xbf16>, vector<8x128xf32> -> vector<8x128xf32>
    %c0_15 = arith.constant 0 : index
    %c0_16 = arith.constant 0 : index
    %19 = vector.load %arg7[%c0_15, %c0_16] : memref<1x128xf32, #tpu.memory_space<vmem>>, vector<1x128xf32>
    %20 = vector.broadcast %19 : vector<1x128xf32> to vector<8x128xf32>
    %21 = arith.addf %18, %20 : vector<8x128xf32>
    %22 = arith.negf %21 : vector<8x128xf32>
    %23 = math.exp %22 : vector<8x128xf32>
    %cst_17 = arith.constant 1.000000e+00 : f32
    %24 = vector.broadcast %cst_17 : f32 to vector<8x128xf32>
    %25 = arith.addf %24, %23 : vector<8x128xf32>
    %26 = arith.divf %24, %25 : vector<8x128xf32>
    %cst_18 = arith.constant 5.000000e-01 : f32
    %27 = vector.broadcast %cst_18 : f32 to vector<8x128xf32>
    %28 = arith.subf %26, %27 : vector<8x128xf32>
    %cst_19 = arith.constant 5.000000e-01 : f32
    %29 = vector.broadcast %cst_19 : f32 to vector<8x128xf32>
    %30 = arith.mulf %29, %28 : vector<8x128xf32>
    %c0_20 = arith.constant 0 : index
    %c0_21 = arith.constant 0 : index
    %31 = vector.load %arg8[%c0_20, %c0_21] : memref<8x128xf32, #tpu.memory_space<vmem>>, vector<8x128xf32>
    tpu.vector_store %arg8[%c0_20, %c0_21], %30 {strides = array<i32>} : memref<8x128xf32, #tpu.memory_space<vmem>>, vector<8x128xf32>,
    return
  }
  func.func @transform_0(%arg0: i32) -> (i32, i32) {
    %c0_i32 = arith.constant 0 : i32
    %c0_i32_0 = arith.constant 0 : i32
    return %arg0, %c0_i32 : i32, i32
  }
  func.func @transform_1(%arg0: i32) -> (i32, i32) {
    %c0_i32 = arith.constant 0 : i32
    %c0_i32_0 = arith.constant 0 : i32
    %c0_i32_1 = arith.constant 0 : i32
    return %c0_i32, %c0_i32_0 : i32, i32
  }
  func.func @transform_2(%arg0: i32) -> (i32, i32) {
    %c0_i32 = arith.constant 0 : i32
    %c0_i32_0 = arith.constant 0 : i32
    %c0_i32_1 = arith.constant 0 : i32
    return %c0_i32, %c0_i32_0 : i32, i32
  }
  func.func @transform_3(%arg0: i32) -> (i32, i32) {
    %c0_i32 = arith.constant 0 : i32
    %c0_i32_0 = arith.constant 0 : i32
    %c0_i32_1 = arith.constant 0 : i32
    return %c0_i32, %c0_i32_0 : i32, i32
  }
  func.func @transform_4(%arg0: i32) -> (i32, i32) {
    %c0_i32 = arith.constant 0 : i32
    %c0_i32_0 = arith.constant 0 : i32
    %c0_i32_1 = arith.constant 0 : i32
    return %c0_i32, %c0_i32_0 : i32, i32
  }
  func.func @transform_5(%arg0: i32) -> (i32, i32) {
    %c0_i32 = arith.constant 0 : i32
    %c0_i32_0 = arith.constant 0 : i32
    %c0_i32_1 = arith.constant 0 : i32
    return %c0_i32, %c0_i32_0 : i32, i32
  }
  func.func @transform_6(%arg0: i32) -> (i32, i32) {
    %c0_i32 = arith.constant 0 : i32
    %c0_i32_0 = arith.constant 0 : i32
    %c0_i32_1 = arith.constant 0 : i32
    return %c0_i32, %c0_i32_0 : i32, i32
  }
  func.func @transform_7(%arg0: i32) -> (i32, i32) {
    %c0_i32 = arith.constant 0 : i32
    %c0_i32_0 = arith.constant 0 : i32
    return %arg0, %c0_i32 : i32, i32
  }
}

</mosaic_0001>

<bundles_post_ra>
// kernel: base_model_forward.1
= control target key start
LH: loop header
LB: loop body
LE: loop exit
PB: predicated region body
PF: predicated region fallthrough
CT: control target
= control target key end

     0   :  { %v969_v51 = vmov 0   ;;  %vm971_vm0 = vmmov 0   ;;  %s1252_s1 = inlined_call_operand.vmem [shape: bf16[384,256], index: 1, kind: input, shape index: {}]   ;;  %s1253_s0 = inlined_call_operand.vmem [shape: bf16[8,384], index: 0, kind: input, shape index: {}]   ;;  %s1254_s3 = inlined_call_operand.vmem [shape: bf16[256,128], index: 3, kind: input, shape index: {}]   ;;  %s1255_s5 = inlined_call_operand.vmem [shape: bf16[128,128], index: 5, kind: input, shape index: {}]   ;;  %s1256_s2 = inlined_call_operand.vmem [shape: f32[1,256], index: 2, kind: input, shape index: {}]   ;;  %s1257_s4 = inlined_call_operand.vmem [shape: f32[1,128], index: 4, kind: input, shape index: {}]   ;;  %s1258_s6 = inlined_call_operand.vmem [shape: f32[1,128], index: 6, kind: input, shape index: {}]   ;;  %s1259_s7 = inlined_call_operand.vmem [shape: f32[8,128], index: 7, kind: output, shape index: {}]  }
   0x1   :  { %v866_v0 = vld [vmem:[%s1252_s1 + $0x4] ss:$8 sps:$4 sm:$0xff]   ;;  %v868_v1 = vld [vmem:[%s1252_s1] ss:$8 sps:$4 sm:$0xff]   ;;  %v869_v2 = vld [vmem:[%s1252_s1 + $0x14] ss:$8 sps:$4 sm:$0xff]  }
   0x2   :  { %340 = vmatprep.subr.bf16.mxu0 %v866_v0  ;;  %v871_v3 = vld [vmem:[%s1252_s1 + $0x10] ss:$8 sps:$4 sm:$0xff]   ;;  %v872_v4 = vld [vmem:[%s1252_s1 + $0x24] ss:$8 sps:$4 sm:$0xff]   ;;  %v874_v5 = vld [vmem:[%s1252_s1 + $0x20] ss:$8 sps:$4 sm:$0xff]  }
   0x3   :  { %341 = vmatpush1.bf16.msra.mxu0 %v868_v1  ;;  %v875_v6 = vld [vmem:[%s1252_s1 + $0x34] ss:$8 sps:$4 sm:$0xff]   ;;  %v877_v7 = vld [vmem:[%s1252_s1 + $0x30] ss:$8 sps:$4 sm:$0xff]   ;;  %v878_v8 = vld [vmem:[%s1252_s1 + $0x44] ss:$8 sps:$4 sm:$0xff]  }
   0x4   :  { %342 = vmatprep.subr.bf16.mxu0 %v869_v2  ;;  %v880_v9 = vld [vmem:[%s1252_s1 + $0x40] ss:$8 sps:$4 sm:$0xff]   ;;  %v881_v10 = vld [vmem:[%s1252_s1 + $0x54] ss:$8 sps:$4 sm:$0xff]   ;;  %v883_v11 = vld [vmem:[%s1252_s1 + $0x50] ss:$8 sps:$4 sm:$0xff]  }
   0x5   :  { %v884_v12 = vld [vmem:[%s1252_s1 + $0x64] ss:$8 sps:$4 sm:$0xff]   ;;  %v886_v15 = vld [vmem:[%s1252_s1 + $0x60] ss:$8 sps:$4 sm:$0xff]   ;;  %v887_v16 = vld [vmem:[%s1252_s1 + $0x74] ss:$8 sps:$4 sm:$0xff]  }
   0x6   :  { %v1054_v13 = vld [vmem:[%s1253_s0] sm:$0xff]  ;;  %v889_v17 = vld [vmem:[%s1252_s1 + $0x70] ss:$8 sps:$4 sm:$0xff]   ;;  %v893_v20 = vld [vmem:[%s1252_s1 + $0x94] ss:$8 sps:$4 sm:$0xff]  }
   0x7   :  { %343 = vmatpush1.bf16.msra.mxu0 %v871_v3  ;;  %v728_v14 = vcombine.high %v1054_v13, %v1054_v13  ;;  %v890_v18 = vld [vmem:[%s1252_s1 + $0x84] ss:$8 sps:$4 sm:$0xff]   ;;  %v892_v19 = vld [vmem:[%s1252_s1 + $0x80] ss:$8 sps:$4 sm:$0xff]   ;;  %v895_v21 = vld [vmem:[%s1252_s1 + $0x90] ss:$8 sps:$4 sm:$0xff]   ;;  %v727_v47 = vcombine.low %v1054_v13, %v1054_v13 }
   0x8   :  { %344 = vmatprep.subr.bf16.mxu0 %v872_v4  ;;  %v941_v22 = vld [vmem:[%s1254_s3 + $0x40] sm:$0xff]   ;;  %v943_v25 = vld [vmem:[%s1254_s3 + $0x48] sm:$0xff]   ;;  %v945_v27 = vld [vmem:[%s1254_s3 + $0x50] sm:$0xff]  }
   0x9   :  { %372 = vmatprep.mubr.bf16.mxu0 %v728_v14  ;;  %v896_v23 = vld [vmem:[%s1252_s1 + $0xa4] ss:$8 sps:$4 sm:$0xff]   ;;  %806 = vmatprep.subr.bf16.mxu1 %v941_v22  ;;  %v898_v28 = vld [vmem:[%s1252_s1 + $0xa0] ss:$8 sps:$4 sm:$0xff]   ;;  %v899_v29 = vld [vmem:[%s1252_s1 + $0xb4] ss:$8 sps:$4 sm:$0xff]  }
   0xa   :  { %v942_v24 = vld [vmem:[%s1254_s3] sm:$0xff]   ;;  %v944_v26 = vld [vmem:[%s1254_s3 + $0x8] sm:$0xff]   ;;  %v946_v30 = vld [vmem:[%s1254_s3 + $0x10] sm:$0xff]  }
   0xb   :  { %345 = vmatpush1.bf16.msra.mxu0 %v874_v5  ;;  %807 = vmatpush3.bf16.msra.mxu1 %v942_v24  ;;  %v947_v31 = vld [vmem:[%s1254_s3 + $0x58] sm:$0xff]   ;;  %v902_v33 = vld [vmem:[%s1252_s1 + $0xc4] ss:$8 sps:$4 sm:$0xff]   ;;  %v904_v35 = vld [vmem:[%s1252_s1 + $0xc0] ss:$8 sps:$4 sm:$0xff]   ;;  %v970_v5 = vmov 0.0  }
   0xc   :  { %346 = vmatprep.subr.bf16.mxu0 %v875_v6  ;;  %808 = vmatprep.subr.bf16.mxu1 %v943_v25  ;;  %v901_v32 = vld [vmem:[%s1252_s1 + $0xb0] ss:$8 sps:$4 sm:$0xff]   ;;  %v949_v36 = vld [vmem:[%s1254_s3 + $0x60] sm:$0xff]   ;;  %v905_v37 = vld [vmem:[%s1252_s1 + $0xd4] ss:$8 sps:$4 sm:$0xff]   ;;  %v79_v6 = vlaneseq }
   0xd   :  { %v948_v34 = vld [vmem:[%s1254_s3 + $0x18] sm:$0xff]   ;;  %v950_v38 = vld [vmem:[%s1254_s3 + $0x20] sm:$0xff]   ;;  %v951_v39 = vld [vmem:[%s1254_s3 + $0x68] sm:$0xff]  }
   0xe   :  { %v907_v40 = vld [vmem:[%s1252_s1 + $0xd0] ss:$8 sps:$4 sm:$0xff]   ;;  %v908_v41 = vld [vmem:[%s1252_s1 + $0xe4] ss:$8 sps:$4 sm:$0xff]   ;;  %v910_v43 = vld [vmem:[%s1252_s1 + $0xe0] ss:$8 sps:$4 sm:$0xff]  }
   0xf   :  { %347 = vmatpush1.bf16.msra.mxu0 %v877_v7  ;;  %809 = vmatpush3.bf16.msra.mxu1 %v944_v26  ;;  %v952_v42 = vld [vmem:[%s1254_s3 + $0x28] sm:$0xff]   ;;  %v911_v44 = vld [vmem:[%s1252_s1 + $0xf4] ss:$8 sps:$4 sm:$0xff]   ;;  %v913_v45 = vld [vmem:[%s1252_s1 + $0xf0] ss:$8 sps:$4 sm:$0xff]   ;;  %v80_v7 = vshrl.u32 %v79_v6, 7 }
  0x10   :  { %348 = vmatprep.subr.bf16.mxu0 %v878_v8  ;;  %810 = vmatprep.subr.bf16.mxu1 %v945_v27  ;;  %v919_v46 = vld [vmem:[%s1252_s1 + $0x104] ss:$8 sps:$4 sm:$0xff]   ;;  %v917_v48 = vld [vmem:[%s1252_s1 + $0x100] ss:$8 sps:$4 sm:$0xff]   ;;  %v922_v49 = vld [vmem:[%s1252_s1 + $0x114] ss:$8 sps:$4 sm:$0xff]  }
  0x11   :  { %v920_v50 = vld [vmem:[%s1252_s1 + $0x110] ss:$8 sps:$4 sm:$0xff]   ;;  %v925_v52 = vld [vmem:[%s1252_s1 + $0x124] ss:$8 sps:$4 sm:$0xff]   ;;  %v923_v53 = vld [vmem:[%s1252_s1 + $0x120] ss:$8 sps:$4 sm:$0xff]  }
  0x12   :  { %v928_v54 = vld [vmem:[%s1252_s1 + $0x134] ss:$8 sps:$4 sm:$0xff]   ;;  %v926_v55 = vld [vmem:[%s1252_s1 + $0x130] ss:$8 sps:$4 sm:$0xff]   ;;  %v931_v56 = vld [vmem:[%s1252_s1 + $0x144] ss:$8 sps:$4 sm:$0xff]  }
  0x13   :  { %349 = vmatpush1.bf16.msra.mxu0 %v880_v9  ;;  %811 = vmatpush3.bf16.msra.mxu1 %v946_v30  ;;  %v929_v57 = vld [vmem:[%s1252_s1 + $0x140] ss:$8 sps:$4 sm:$0xff]   ;;  %v934_v58 = vld [vmem:[%s1252_s1 + $0x154] ss:$8 sps:$4 sm:$0xff]   ;;  %v932_v59 = vld [vmem:[%s1252_s1 + $0x150] ss:$8 sps:$4 sm:$0xff]  }
  0x14   :  { %350 = vmatprep.subr.bf16.mxu0 %v881_v10  ;;  %812 = vmatprep.subr.bf16.mxu1 %v947_v31  ;;  %v937_v60 = vld [vmem:[%s1252_s1 + $0x164] ss:$8 sps:$4 sm:$0xff]   ;;  %v935_v61 = vld [vmem:[%s1252_s1 + $0x160] ss:$8 sps:$4 sm:$0xff]   ;;  %v940_v62 = vld [vmem:[%s1252_s1 + $0x174] ss:$8 sps:$4 sm:$0xff]  }
  0x15   :  { %v938_v63 = vld [vmem:[%s1252_s1 + $0x170] ss:$8 sps:$4 sm:$0xff]   ;;  %v916_v0 = vld [vmem:[%s1253_s0 + $0x8] ss:$0 sps:$4 sm:$0xff]   ;;  %v81_v8 = vsub.s32 0, %v80_v7  ;;  %v85_v10 = vsub.s32 1, %v80_v7 }
  0x16   :  { %v953_v1 = vld [vmem:[%s1254_s3 + $0x70] sm:$0xff]   ;;  %v955_v3 = vld [vmem:[%s1254_s3 + $0x78] sm:$0xff]   ;;  %v77_v9 = vld [vmem:[%s1256_s2] sm:$0x3] }
  0x17   :  { %351 = vmatpush1.bf16.msra.mxu0 %v883_v11  ;;  %813 = vmatpush3.bf16.msra.mxu1 %v948_v34  ;;  %v954_v2 = vld [vmem:[%s1254_s3 + $0x30] sm:$0xff]   ;;  %v956_v4 = vld [vmem:[%s1254_s3 + $0x38] sm:$0xff]   ;;  %v82_v11 = vrot.slane %v77_v9, %v81_v8  ;;  %v957_v22 = vld [vmem:[%s1255_s5] sm:$0xff]  }
  0x18   :  { %352 = vmatprep.subr.bf16.mxu0 %v884_v12  ;;  %814 = vmatprep.subr.bf16.mxu1 %v949_v36  ;;  %v86_v12 = vrot.slane %v77_v9, %v85_v10  ;;  %v958_v24 = vld [vmem:[%s1255_s5 + $0x8] sm:$0xff]   ;;  %v959_v25 = vld [vmem:[%s1255_s5 + $0x10] sm:$0xff]   ;;  %v960_v26 = vld [vmem:[%s1255_s5 + $0x18] sm:$0xff]  }
  0x19   :  { %v961_v27 = vld [vmem:[%s1255_s5 + $0x20] sm:$0xff]   ;;  %v964_v30 = vld [vmem:[%s1255_s5 + $0x38] sm:$0xff]  }
  0x1b   :  { %353 = vmatpush1.bf16.msra.mxu0 %v886_v15  ;;  %815 = vmatpush3.bf16.msra.mxu1 %v950_v38 }
  0x1c   :  { %354 = vmatprep.subr.bf16.mxu0 %v887_v16  ;;  %816 = vmatprep.subr.bf16.mxu1 %v951_v39 }
  0x1f   :  { %355 = vmatpush1.bf16.msra.mxu0 %v889_v17  ;;  %817 = vmatpush3.bf16.msra.mxu1 %v952_v42 }
  0x20   :  { %356 = vmatprep.subr.bf16.mxu0 %v890_v18  ;;  %818 = vmatprep.subr.bf16.mxu1 %v953_v1 }
  0x23   :  { %357 = vmatpush1.bf16.msra.mxu0 %v892_v19  ;;  %819 = vmatpush3.bf16.msra.mxu1 %v954_v2 }
  0x24   :  { %358 = vmatprep.subr.bf16.mxu0 %v893_v20  ;;  %820 = vmatprep.subr.bf16.mxu1 %v955_v3 }
  0x27   :  { %359 = vmatpush1.bf16.msra.mxu0 %v895_v21  ;;  %821 = vmatpush3.bf16.msra.mxu1 %v956_v4 }
  0x28   :  { %360 = vmatprep.subr.bf16.mxu0 %v896_v23  ;;  %837 = vmatprep.subr.bf16.mxu1 %v970_v5 }
  0x2b   :  { %361 = vmatpush1.bf16.msra.mxu0 %v898_v28  ;;  %v962_v28 = vld [vmem:[%s1255_s5 + $0x28] sm:$0xff]  }
  0x2c   :  { %362 = vmatprep.subr.bf16.mxu0 %v899_v29  ;;  %v963_v29 = vld [vmem:[%s1255_s5 + $0x30] sm:$0xff]  }
  0x2f   :  { %363 = vmatpush1.bf16.msra.mxu0 %v901_v32  ;;  %v778_v32 = vld [vmem:[%s1257_s4] ss:$0 sm:$0xff] }
  0x30   :  { %364 = vmatprep.subr.bf16.mxu0 %v902_v33 }
  0x33   :  { %365 = vmatpush1.bf16.msra.mxu0 %v904_v35 }
  0x34   :  { %366 = vmatprep.subr.bf16.mxu0 %v905_v37 }
  0x37   :  { %367 = vmatpush1.bf16.msra.mxu0 %v907_v40  ;;  %v795_v40 = vld [vmem:[%s1258_s6] ss:$0 sm:$0xff] }
  0x38   :  { %368 = vmatprep.subr.bf16.mxu0 %v908_v41 }
  0x3b   :  { %369 = vmatpush1.bf16.msra.mxu0 %v910_v43 }
  0x3c   :  { %370 = vmatprep.subr.bf16.mxu0 %v911_v44 }
  0x3f   :  { %371 = vmatpush1.bf16.msra.mxu0 %v913_v45 }
  0x40   :  { %381 = vmatprep.subr.bf16.mxu0 %v919_v46 }
  0x42   :  { %373 = vmatmul.mubr.bf16.vlgmr.msra.gmra.mrb[0].mxu0 %v727_v47 }
  0x43   :  { %382 = vmatpush1.bf16.msra.mxu0 %v917_v48  ;;  %413 = vmatprep.mubr.bf16.mxu0 %v969_v51 }
  0x44   :  { %383 = vmatprep.subr.bf16.mxu0 %v922_v49 }
  0x47   :  { %384 = vmatpush1.bf16.msra.mxu0 %v920_v50 }
  0x48   :  { %385 = vmatprep.subr.bf16.mxu0 %v925_v52 }
  0x4b   :  { %386 = vmatpush1.bf16.msra.mxu0 %v923_v53 }
  0x4c   :  { %387 = vmatprep.subr.bf16.mxu0 %v928_v54 }
  0x4f   :  { %388 = vmatpush1.bf16.msra.mxu0 %v926_v55 }
  0x50   :  { %389 = vmatprep.subr.bf16.mxu0 %v931_v56 }
  0x53   :  { %390 = vmatpush1.bf16.msra.mxu0 %v929_v57 }
  0x54   :  { %391 = vmatprep.subr.bf16.mxu0 %v934_v58 }
  0x57   :  { %392 = vmatpush1.bf16.msra.mxu0 %v932_v59 }
  0x58   :  { %393 = vmatprep.subr.bf16.mxu0 %v937_v60 }
  0x5b   :  { %394 = vmatpush1.bf16.msra.mxu0 %v935_v61 }
  0x5c   :  { %395 = vmatprep.subr.bf16.mxu0 %v940_v62 }
  0x5f   :  { %396 = vmatpush1.bf16.msra.mxu0 %v938_v63 }
  0x62   :  { %414 = vmatmul.mubr.bf16.vlgmr.msra.gmra.mrb[0].mxu0 %v916_v0 }
 0x135   :  { %v415_v13 = vpop.f32.mrb[0].mxu0 }
 0x136   :  { %v857_v14 = vadd.f32 %v415_v13, %v82_v11  ;;  %v417_v15 = vpop.f32.mrb[1].mxu0 }
 0x137   :  { %v858_v16 = vadd.f32 %v417_v15, %v86_v12  ;;  %v419_v17 = vpop.f32.mrb[2].mxu0 }
 0x138   :  { %v422_v18 = vmax.f32 %v857_v14, 0.0  ;;  %v420_v19 = vpop.f32.mrb[3].mxu0 }
 0x139   :  { %v423_v20 = vmax.f32 %v858_v16, 0.0 }
 0x13a   :  { %v424_v23 = vpack.c.bf16 %v422_v18, %v422_v18 }
 0x13b   :  { %v425_v21 = vpack.c.bf16 %v423_v20, %v423_v20 }
 0x13d   :  { %593 = vmatprep.mubr.bf16.mxu1 %v425_v21 }
 0x13e   :  { %594 = vmatmul.mubr.bf16.vlgmr.msra.gmra.mrb[0].mxu1 %v424_v23 }
 0x13f   :  { %838 = vmatpush3.bf16.msra.mxu1 %v957_v22  ;;  %853 = vmatprep.mubr.msk.bf16.mxu1 %vm971_vm0, %v970_v5 }
 0x140   :  { %839 = vmatprep.subr.bf16.mxu1 %v970_v5 }
 0x143   :  { %840 = vmatpush3.bf16.msra.mxu1 %v958_v24 }
 0x144   :  { %841 = vmatprep.subr.bf16.mxu1 %v970_v5 }
 0x147   :  { %842 = vmatpush3.bf16.msra.mxu1 %v959_v25 }
 0x148   :  { %843 = vmatprep.subr.bf16.mxu1 %v970_v5 }
 0x14b   :  { %844 = vmatpush3.bf16.msra.mxu1 %v960_v26 }
 0x14c   :  { %845 = vmatprep.subr.bf16.mxu1 %v970_v5 }
 0x14f   :  { %846 = vmatpush3.bf16.msra.mxu1 %v961_v27 }
 0x150   :  { %847 = vmatprep.subr.bf16.mxu1 %v970_v5 }
 0x153   :  { %848 = vmatpush3.bf16.msra.mxu1 %v962_v28 }
 0x154   :  { %849 = vmatprep.subr.bf16.mxu1 %v970_v5 }
 0x157   :  { %850 = vmatpush3.bf16.msra.mxu1 %v963_v29 }
 0x158   :  { %851 = vmatprep.subr.bf16.mxu1 %v970_v5 }
 0x15b   :  { %852 = vmatpush3.bf16.msra.mxu1 %v964_v30 }
 0x211   :  { %v822_v31 = vpop.f32.mrb[0].mxu1 }
 0x212   :  { %v823_v33 = vpop.f32.mrb[1].mxu1 }
 0x213   :  { %v824_v34 = vadd.f32 %v823_v33, %v822_v31  ;;  %v825_v35 = vpop.f32.mrb[2].mxu1 }
 0x214   :  { %v826_v36 = vpop.f32.mrb[3].mxu1 }
 0x215   :  { %v596_v37 = vadd.f32 %v824_v34, %v778_v32 }
 0x217   :  { %v601_v38 = vmax.f32 %v596_v37, 0.0 }
 0x219   :  { %v602_v39 = vpack.c.bf16 %v601_v38, %v601_v38 }
 0x21b   :  { %854 = vmatmul.mubr.bf16.vlgmr.msra.gmra.mrb[4].mxu1 %v602_v39 }
 0x2ee   :  { %v708_v41 = vpop.f32.mrb[4].mxu1 }
 0x2ef   :  { %v709_v42 = vadd.f32 %v795_v40, %v708_v41  ;;  %v855_v43 = vpop.f32.mrb[5].mxu1 }
 0x2f0   :  { %v711_v44 = vpop.f32.mrb[6].mxu1 }
 0x2f1   :  { %v804_v45 = vmul.f32 -1.442695, %v709_v42  ;;  %v856_v46 = vpop.f32.mrb[7].mxu1 }
 0x2f3   :  { %965 = vpow2.f32 %v804_v45 }
 0x2fd   :  { %v966_v47 = vpop.eup %965 }
 0x2fe   :  { %v717_v48 = vadd.f32 1.0, %v966_v47 }
 0x300   :  { %967 = vrcp.f32 %v717_v48 }
 0x30a   :  { %v968_v49 = vpop.eup %967 }
 0x30b   :  { %v805_v50 = vadd.f32 -0.5, %v968_v49 }
 0x30d   :  { %v721_v51 = vmul.f32 0.5, %v805_v50 }
 0x30f   :  { %722 = vst [vmem:[%s1259_s7] sm:$0xff] %v721_v51 }

</bundles_post_ra>
